<compile_context>
chip_gen: v5e
topology: v5e:2x2
jax: 0.10.0
libtpu: 0.0.40
codegen_flags: <defaults>
</compile_context>

<pallas_src>
import functools

import numpy as np
import jax
import jax.numpy as jnp
from jax.experimental import pallas as pl
from jax.experimental.pallas import tpu as pltpu


def _hpass_matrix(w: int) -> np.ndarray:
    """(W, 2W) operator for one axis: replicate-pad(1) + [1,3,3,1]/4 filter +
    stride-2 transposed conv + crop (filt_size=4, stride=2 defaults)."""
    u = np.zeros((w, 2 * w), np.float32)
    for q in range(w):
        u[q, 2 * q] += 0.75
        u[max(q - 1, 0), 2 * q] += 0.25
        u[q, 2 * q + 1] += 0.75
        u[min(q + 1, w - 1), 2 * q + 1] += 0.25
    return u


def _upsample_kernel(x_ref, uw_ref, o_ref, *, h: int):
    # x_ref : (Rb, W)   a block of whole images (Rb = imgs*h rows), W in lanes
    # uw_ref: (W, 2W)   horizontal polyphase operator (constant, VMEM-resident)
    # o_ref : (Rb, 4W)  per input row: [even output row | odd output row]
    x = x_ref[...]
    two_w = uw_ref.shape[1]
    rb = x.shape[0]

    # ---- horizontal pass: one MXU matmul does pad + filter + interleave ----
    # Kept f32 x f32 for exactness vs. the conv reference; the op is HBM-bound
    # at these widths so the extra MXU passes are hidden under the DMA.
    yw = jnp.dot(x, uw_ref[...], preferred_element_type=jnp.float32)  # (Rb, 2W)

    # ---- vertical pass: XLU sublane rolls + VPU FMAs -----------------------
    # Blocks contain whole images and start on an image boundary, so the
    # block-local row index mod h is the within-image row index. The mod/and
    # runs on a (Rb, 1) column; only the compares see the full tile.
    q = jax.lax.broadcasted_iota(jnp.int32, (rb, 1), 0)
    q = (q & (h - 1)) if (h & (h - 1)) == 0 else (q % h)
    qb = jnp.broadcast_to(q, yw.shape)                     # cheap lane splat

    y_up = pltpu.roll(yw, 1, axis=0)                       # row q-1 (wraps)
    y_dn = pltpu.roll(yw, rb - 1, axis=0)                  # row q+1 (wraps)
    y_up = jnp.where(qb == 0, yw, y_up)                    # replicate top edge
    y_dn = jnp.where(qb == h - 1, yw, y_dn)                # replicate bottom edge

    o_ref[:, 0:two_w] = (0.75 * yw + 0.25 * y_up).astype(o_ref.dtype)  # row 2q
    o_ref[:, two_w:] = (0.75 * yw + 0.25 * y_dn).astype(o_ref.dtype)   # row 2q+1


def _choose_images_per_block(n_img: int, h: int, w: int, itemsize: int) -> int:
    """Images (N*C planes) per grid step: whole images only, Rb = imgs*h a
    multiple of 8 sublanes, per-step working set inside a conservative
    cross-generation VMEM budget, and >= ~512 rows where possible to amortize
    the ~0.35us/step pipeline overhead."""
    # Live bytes per step: double-buffered input + output tiles, plus ~3 f32
    # temporaries of width 2W (yw / y_up / y_dn).
    per_img = h * w * itemsize * (2 * 1 + 2 * 4) + h * (2 * w) * 4 * 3
    budget = 8 * 1024 * 1024       # fits v5e's 16 MiB scoped default w/ headroom
    target_rows = 512              # ~85% of HBM roofline at >=512-row tiles

    divisors = [d for d in range(1, n_img + 1) if n_img % d == 0]
    valid = [d for d in divisors if (d * h) % 8 == 0 or d == n_img]
    if not valid:
        valid = [n_img]
    fitting = [d for d in valid if d * per_img <= budget]
    if not fitting:
        return min(valid)          # best effort for a huge single image plane
    for d in sorted(fitting):
        if d * h >= target_rows:
            return d               # smallest block that amortizes overhead
    return max(fitting)            # whole problem is small: one / few steps


def upsample(x, *, filt_size: int = 4, stride: int = 2, pad_type: str = "repl"):
    """x: (N, C, H, W) float32 -> (N, C, 2H, 2W). Matches Upsample(channels=C)
    with the module's default arguments."""
    # TODO(synk): only the default config (filt_size=4, stride=2, 'repl' pad)
    # is implemented; other filter sizes / strides need a re-derived operator.
    assert (filt_size, stride, pad_type) == (4, 2, "repl")
    # TODO(synk): bf16 inputs (min tile (16,128), lower-precision vertical
    # pass) are not wired up; f32 only.
    assert x.dtype == jnp.float32
    n, c, h, w = x.shape
    itemsize = x.dtype.itemsize
    n_img = n * c
    r = n_img * h
    x2d = x.reshape(r, w)                       # free reshape, NCHW order kept
    uw = jnp.asarray(_hpass_matrix(w))

    imgs = _choose_images_per_block(n_img, h, w, itemsize)
    rb = imgs * h
    grid = (r // rb,)

    # Explicit VMEM budget (2x headroom over the estimate, capped well below
    # v7x's 64 MiB physical VMEM).
    vmem_est = ((2 * rb * w + 2 * rb * 4 * w) * itemsize
                + 3 * rb * 2 * w * 4 + 2 * w * 2 * w * 4)
    vmem_limit = int(min(max(2 * vmem_est, 16 * 1024 * 1024), 48 * 1024 * 1024))

    cost = pl.CostEstimate(
        flops=2 * r * w * (2 * w) + 6 * r * (2 * w),
        transcendentals=0,
        bytes_accessed=(r * w + r * 4 * w) * itemsize + w * 2 * w * 4,
    )

    out = pl.pallas_call(
        functools.partial(_upsample_kernel, h=h),
        out_shape=jax.ShapeDtypeStruct((r, 4 * w), x.dtype),
        grid=grid,
        in_specs=[
            pl.BlockSpec((rb, w), lambda i: (i, 0)),
            pl.BlockSpec((w, 2 * w), lambda i: (0, 0)),   # resident operator
        ],
        out_specs=pl.BlockSpec((rb, 4 * w), lambda i: (i, 0)),
        compiler_params=pltpu.CompilerParams(
            dimension_semantics=("parallel",),            # megacore-shard on v7x
            vmem_limit_bytes=vmem_limit),
        cost_estimate=cost,
    )(x2d, uw)

    # (R, 4W) = (n, c, q, [even|odd]) -> (N, C, 2H, 2W); contiguous merges (free).
    return out.reshape(n, c, 2 * h, 2 * w)


def upsample_ref(x):
    """Pure-JAX mirror of the PyTorch forward, for correctness checking."""
    n, c, h, w = x.shape
    a = jnp.array([1.0, 3.0, 3.0, 1.0], jnp.float32)
    filt = jnp.outer(a, a) / jnp.sum(jnp.outer(a, a)) * (2 ** 2)   # * stride**2
    kernel = jnp.broadcast_to(filt, (c, 1, 4, 4))                  # depthwise OIHW
    xp = jnp.pad(x, ((0, 0), (0, 0), (1, 1), (1, 1)), mode="edge") # ReplicationPad2d(1)
    # conv_transpose2d(stride=2, padding=2) == lhs-dilated conv with padding
    # k-1-p = 1 and a spatially flipped kernel (symmetric here).
    y = jax.lax.conv_general_dilated(
        xp, kernel,
        window_strides=(1, 1),
        padding=((1, 1), (1, 1)),
        lhs_dilation=(2, 2),
        dimension_numbers=("NCHW", "OIHW", "NCHW"),
        feature_group_count=c)
    y = y[:, :, 1:, 1:]           # [:, :, 1:, 1:]
    return y[:, :, :-1, :-1]      # filt_odd is False for filt_size=4


if __name__ == "__main__":
    key = jax.random.PRNGKey(0)

    # Primary small config.
    N, C, H, W = 2, 4, 16, 16
    x = jax.random.normal(key, (N, C, H, W), dtype=jnp.float32)
    out = jax.block_until_ready(upsample(x))
    ref = jax.block_until_ready(upsample_ref(x))
    assert out.shape == (N, C, 2 * H, 2 * W)
    assert jnp.allclose(out, ref, atol=1e-5, rtol=1e-5), \
        f"max abs err {jnp.max(jnp.abs(out - ref))}"

    # Extra check: a shape large enough to span several grid steps, exercising
    # the tiled / double-buffered path and per-block edge replication.
    key, sub = jax.random.split(key)
    x2 = jax.random.normal(sub, (4, 32, 16, 16), dtype=jnp.float32)
    out2 = jax.block_until_ready(upsample(x2))
    ref2 = jax.block_until_ready(upsample_ref(x2))
    assert jnp.allclose(out2, ref2, atol=1e-5, rtol=1e-5), \
        f"tiled case max abs err {jnp.max(jnp.abs(out2 - ref2))}"

    print("KERNEL_OK")
</pallas_src>

<mosaic_0001>
module attributes {stable_mosaic.version = 11 : i64} {
  func.func @_upsample_kernel(%arg0: i32, %arg1: memref<128x16xf32, #tpu.memory_space<vmem>>, %arg2: memref<16x32xf32, #tpu.memory_space<vmem>>, %arg3: memref<128x64xf32, #tpu.memory_space<vmem>>) attributes {dimension_semantics = [#tpu.dimension_semantics<parallel>], iteration_bounds = array<i64: 1>, scalar_prefetch = 0 : i64, scratch_operands = 0 : i64, tpu.core_type = #tpu.core_type<tc>, window_params = [{transform_indices = @transform_0, window_bounds = array<i64: 128, 16>}, {pipeline_mode = #tpu.pipeline_mode<synchronous>, transform_indices = @transform_1, window_bounds = array<i64: 16, 32>}, {transform_indices = @transform_2, window_bounds = array<i64: 128, 64>}]} {
    %c0 = arith.constant 0 : index
    %c0_0 = arith.constant 0 : index
    %0 = vector.load %arg1[%c0, %c0_0] : memref<128x16xf32, #tpu.memory_space<vmem>>, vector<128x16xf32>
    %c0_1 = arith.constant 0 : index
    %c0_2 = arith.constant 0 : index
    %1 = vector.load %arg2[%c0_1, %c0_2] : memref<16x32xf32, #tpu.memory_space<vmem>>, vector<16x32xf32>
    %cst = arith.constant dense<0.000000e+00> : vector<128x32xf32>
    %2 = tpu.matmul %0, %1, %cst {dimension_numbers = #tpu.dot_dimension_numbers<[1], [0], [0], [1], [0, 0, 1, 1], [], []>} : vector<128x16xf32>, vector<16x32xf32>, vector<128x32xf32> -> vector<128x32xf32>
    %3 = tpu.iota {dimensions = array<i32: 0>} : vector<128x1xi32>
    %c15_i32 = arith.constant 15 : i32
    %4 = vector.broadcast %c15_i32 : i32 to vector<128x1xi32>
    %5 = arith.andi %3, %4 : vector<128x1xi32>
    %6 = vector.shape_cast %5 : vector<128x1xi32> to vector<128x1xi32>
    %7 = vector.broadcast %6 : vector<128x1xi32> to vector<128x32xi32>
    %c1_i32 = arith.constant 1 : i32
    %8 = tpu.dynamic_rotate %2 by %c1_i32 dim 0 : vector<128x32xf32>, i32 -> vector<128x32xf32>
    %c127_i32 = arith.constant 127 : i32
    %9 = tpu.dynamic_rotate %2 by %c127_i32 dim 0 : vector<128x32xf32>, i32 -> vector<128x32xf32>
    %c0_i32 = arith.constant 0 : i32
    %10 = vector.broadcast %c0_i32 : i32 to vector<128x32xi32>
    %11 = arith.cmpi eq, %7, %10 : vector<128x32xi32>
    %12 = arith.select %11, %2, %8 : vector<128x32xi1>, vector<128x32xf32>
    %c15_i32_3 = arith.constant 15 : i32
    %13 = vector.broadcast %c15_i32_3 : i32 to vector<128x32xi32>
    %14 = arith.cmpi eq, %7, %13 : vector<128x32xi32>
    %15 = arith.select %14, %2, %9 : vector<128x32xi1>, vector<128x32xf32>
    %cst_4 = arith.constant 7.500000e-01 : f32
    %16 = vector.broadcast %cst_4 : f32 to vector<128x32xf32>
    %17 = arith.mulf %16, %2 : vector<128x32xf32>
    %cst_5 = arith.constant 2.500000e-01 : f32
    %18 = vector.broadcast %cst_5 : f32 to vector<128x32xf32>
    %19 = arith.mulf %18, %12 : vector<128x32xf32>
    %20 = arith.addf %17, %19 : vector<128x32xf32>
    %c0_6 = arith.constant 0 : index
    %c0_7 = arith.constant 0 : index
    %21 = vector.load %arg3[%c0_6, %c0_7] : memref<128x64xf32, #tpu.memory_space<vmem>>, vector<128x32xf32>
    tpu.vector_store %arg3[%c0_6, %c0_7], %20 {strides = array<i32>} : memref<128x64xf32, #tpu.memory_space<vmem>>, vector<128x32xf32>,
    %cst_8 = arith.constant 7.500000e-01 : f32
    %22 = vector.broadcast %cst_8 : f32 to vector<128x32xf32>
    %23 = arith.mulf %22, %2 : vector<128x32xf32>
    %cst_9 = arith.constant 2.500000e-01 : f32
    %24 = vector.broadcast %cst_9 : f32 to vector<128x32xf32>
    %25 = arith.mulf %24, %15 : vector<128x32xf32>
    %26 = arith.addf %23, %25 : vector<128x32xf32>
    %c0_10 = arith.constant 0 : index
    %c32 = arith.constant 32 : index
    %27 = vector.load %arg3[%c0_10, %c32] : memref<128x64xf32, #tpu.memory_space<vmem>>, vector<128x32xf32>
    tpu.vector_store %arg3[%c0_10, %c32], %26 {strides = array<i32>} : memref<128x64xf32, #tpu.memory_space<vmem>>, vector<128x32xf32>,
    return
  }
  func.func @transform_0(%arg0: i32) -> (i32, i32) {
    %c0_i32 = arith.constant 0 : i32
    %c0_i32_0 = arith.constant 0 : i32
    return %arg0, %c0_i32 : i32, i32
  }
  func.func @transform_1(%arg0: i32) -> (i32, i32) {
    %c0_i32 = arith.constant 0 : i32
    %c0_i32_0 = arith.constant 0 : i32
    %c0_i32_1 = arith.constant 0 : i32
    return %c0_i32, %c0_i32_0 : i32, i32
  }
  func.func @transform_2(%arg0: i32) -> (i32, i32) {
    %c0_i32 = arith.constant 0 : i32
    %c0_i32_0 = arith.constant 0 : i32
    return %arg0, %c0_i32 : i32, i32
  }
}

</mosaic_0001>

<bundles_post_ra>
// kernel: tpu_custom_call.1
= control target key start
LH: loop header
LB: loop body
LE: loop exit
PB: predicated region body
PF: predicated region fallthrough
CT: control target
= control target key end

     0   :  { %vm29_vm0 = vcmask 130048   ;;  %v143_v18 = vlaneseq  ;;  %vm354_vm4 = vcmask 261120   ;;  %s1154_s1 = inlined_call_operand.vmem [shape: f32[16,32], index: 1, kind: input, shape index: {}]   ;;  %s1155_s0 = inlined_call_operand.vmem [shape: f32[128,16], index: 0, kind: input, shape index: {}]   ;;  %s1156_s2 = inlined_call_operand.vmem [shape: f32[128,64], index: 2, kind: output, shape index: {}]  }
   0x1   :  { %v28_v0 = vld [vmem:[%s1154_s1 + $0x8] sm:$0xff]  ;;  %v27_v1 = vld [vmem:[%s1154_s1] sm:$0xff]  ;;  %v13_v10 = vld [vmem:[%s1155_s0 + $0x10] sm:$0xff] }
   0x2   :  { %92 = vmatpush.msra.mxu0 %v28_v0  ;;  %504 = vmatpush.msra.mxu1 %v28_v0  ;;  %v11_v2 = vld [vmem:[%s1155_s0] sm:$0xff]  ;;  %v12_v6 = vld [vmem:[%s1155_s0 + $0x8] sm:$0xff]  ;;  %v17_v11 = vld [vmem:[%s1155_s0 + $0x30] sm:$0xff]  ;;  %v597_v19 = vshrl.u32 %v143_v18, 7 }
   0x3   :  { %505 = vmatpush.msra.mxu2 %v28_v0  ;;  %506 = vmatpush.msra.mxu3 %v28_v0  ;;  %v15_v3 = vld [vmem:[%s1155_s0 + $0x20] sm:$0xff]  ;;  %v16_v7 = vld [vmem:[%s1155_s0 + $0x28] sm:$0xff]  ;;  %v21_v12 = vld [vmem:[%s1155_s0 + $0x50] sm:$0xff] }
   0x4   :  { %93 = vmatpush.msra.mxu0 %v27_v1  ;;  %507 = vmatpush.msra.mxu1 %v27_v1  ;;  %v19_v4 = vld [vmem:[%s1155_s0 + $0x40] sm:$0xff]  ;;  %v20_v8 = vld [vmem:[%s1155_s0 + $0x48] sm:$0xff]  ;;  %v25_v13 = vld [vmem:[%s1155_s0 + $0x70] sm:$0xff]  ;;  %v150_v22 = vadd.s32 48, %v597_v19  ;;  %v605_v23 = vadd.s32 16, %v597_v19  ;;  %v154_v24 = vadd.s32 80, %v597_v19 }
   0x5   :  { %v23_v5 = vld [vmem:[%s1155_s0 + $0x60] sm:$0xff]  ;;  %508 = vmatpush.msra.mxu2 %v27_v1  ;;  %509 = vmatpush.msra.mxu3 %v27_v1  ;;  %v24_v9 = vld [vmem:[%s1155_s0 + $0x68] sm:$0xff]  ;;  %v14_v14 = vld [vmem:[%s1155_s0 + $0x18] sm:$0xff]  ;;  %v158_v25 = vadd.s32 112, %v597_v19  ;;  %v610_v26 = vadd.s32 64, %v597_v19  ;;  %v613_v27 = vadd.s32 40, %v597_v19 }
   0x6   :  { %488 = vmatmul.msk.f32.vlgmr.msra.gmra.mxu0 %vm29_vm0, %v11_v2  ;;  %492 = vmatmul.msk.f32.vlgmr.msra.gmra.mxu1 %vm29_vm0, %v15_v3  ;;  %v18_v15 = vld [vmem:[%s1155_s0 + $0x38] sm:$0xff]  ;;  %v616_v28 = vadd.s32 8, %v597_v19  ;;  %v166_v29 = vand.u32 15, %v150_v22  ;;  %vm192_vm1 = vcmp.lt.s32.totalorder %v597_v19, 1  ;;  %vm225_vm2 = vcmp.lt.s32.totalorder %v597_v19, 7 }
   0x7   :  { %496 = vmatmul.msk.f32.vlgmr.msra.gmra.mxu2 %vm29_vm0, %v19_v4  ;;  %500 = vmatmul.msk.f32.vlgmr.msra.gmra.mxu3 %vm29_vm0, %v23_v5  ;;  %v22_v16 = vld [vmem:[%s1155_s0 + $0x58] sm:$0xff]  ;;  %v162_v30 = vand.u32 15, %v605_v23  ;;  %v170_v33 = vand.u32 15, %v154_v24  ;;  %v174_v34 = vand.u32 15, %v158_v25  ;;  %v626_v35 = vadd.s32 56, %v597_v19 }
   0x8   :  { %v26_v17 = vld [vmem:[%s1155_s0 + $0x78] sm:$0xff]  ;;  %v168_v36 = vand.u32 15, %v610_v26  ;;  %v165_v41 = vand.u32 15, %v613_v27  ;;  %v161_v42 = vand.u32 15, %v616_v28  ;;  %vm641_vm3 = vcmp.eq.s32.totalorder %v166_v29, 0  ;;  %s511_s0 = smov 32  }
   0x9   :  { %v682_v62 = vadd.s32 24, %v597_v19  ;;  %vm707_vm5 = vcmp.eq.s32.totalorder %v170_v33, 0  ;;  %vm711_vm6 = vcmp.eq.s32.totalorder %v174_v34, 0  ;;  %vm729_vm7 = vcmp.eq.s32.totalorder %v162_v30, 0 }
   0xa   :  { %v156_v24 = vadd.s32 96, %v597_v19  ;;  %vm753_vm8 = vcmp.eq.s32.totalorder %v165_v41, 15  ;;  %vm801_vm9 = vcmp.eq.s32.totalorder %v168_v36, 0  ;;  %vm853_vm10 = vcmp.eq.s32.totalorder %v161_v42, 15 }
   0xe   :  { %489 = vmatmul.msk.f32.gmra.mxu0 %vm29_vm0, %v12_v6  ;;  %493 = vmatmul.msk.f32.gmra.mxu1 %vm29_vm0, %v16_v7  ;;  %v695_v7 = vadd.s32 32, %v597_v19 }
   0xf   :  { %497 = vmatmul.msk.f32.gmra.mxu2 %vm29_vm0, %v20_v8  ;;  %501 = vmatmul.msk.f32.gmra.mxu3 %vm29_vm0, %v24_v9  ;;  %v698_v8 = vadd.s32 88, %v597_v19 }
  0x16   :  { %490 = vmatmul.msk.f32.gmra.mxu0 %vm29_vm0, %v13_v10  ;;  %494 = vmatmul.msk.f32.gmra.mxu1 %vm29_vm0, %v17_v11 }
  0x17   :  { %498 = vmatmul.msk.f32.gmra.mxu2 %vm29_vm0, %v21_v12  ;;  %502 = vmatmul.msk.f32.gmra.mxu3 %vm29_vm0, %v25_v13 }
  0x1e   :  { %491 = vmatmul.msk.f32.gmra.mxu0 %vm29_vm0, %v14_v14  ;;  %495 = vmatmul.msk.f32.gmra.mxu1 %vm29_vm0, %v18_v15 }
  0x1f   :  { %499 = vmatmul.msk.f32.gmra.mxu2 %vm29_vm0, %v22_v16  ;;  %503 = vmatmul.msk.f32.gmra.mxu3 %vm29_vm0, %v26_v17 }
  0x83   :  { %v599_v20 = vpop.f32.mrf.mxu0  ;;  %v601_v21 = vpop.f32.mrf.mxu1 }
  0x84   :  { %v180_v37 = vrot.slane %v601_v21, 7  ;;  %v213_v38 = vrot.slane %v601_v21, 1  ;;  %v176_v43 = vrot.slane %v599_v20, 7  ;;  %v1158_v44 = vrot.slane %v599_v20, 1 }
  0x85   :  { %v648_v50 = vmul.f32 0.75, %v601_v21  ;;  %v651_v51 = vmul.f32 0.75, %v599_v20 }
  0x8a   :  { %v621_v31 = vpop.f32.mrf.mxu2  ;;  %v623_v32 = vpop.f32.mrf.mxu3 }
  0x8b   :  { %v631_v39 = vpop.f32.mrf.mxu0  ;;  %v633_v40 = vpop.f32.mrf.mxu1  ;;  %v184_v63 = vrot.slane %v621_v31, 7  ;;  %v188_v0 = vrot.slane %v623_v32, 7  ;;  %v1159_v9 = vrot.slane %v621_v31, 1  ;;  %v221_v25 = vrot.slane %v623_v32, 1 }
  0x8c   :  { %v177_v45 = vrot.slane %v631_v39, 7  ;;  %v210_v46 = vrot.slane %v631_v39, 1  ;;  %v181_v48 = vrot.slane %v633_v40, 7  ;;  %v214_v49 = vrot.slane %v633_v40, 1 }
  0x8d   :  { %v660_v53 = vmul.f32 0.75, %v631_v39  ;;  %v663_v54 = vmul.f32 0.75, %v633_v40 }
  0x8e   :  { %v207_v52 = vsel %vm192_vm1, %v176_v43, %v177_v45  ;;  %v240_v55 = vsel %vm225_vm2, %v1158_v44, %v210_v46  ;;  %v203_v57 = vsel %vm192_vm1, %v180_v37, %v181_v48  ;;  %v236_v58 = vsel %vm225_vm2, %v213_v38, %v214_v49 }
  0x8f   :  { %v323_v56 = vmul.f32 0.25, %v207_v52  ;;  %v371_v59 = vmul.f32 0.25, %v240_v55  ;;  %v327_v60 = vmul.f32 0.25, %v203_v57  ;;  %v375_v61 = vmul.f32 0.25, %v236_v58 }
  0x90   :  { %v758_v57 = vmul.f32 0.75, %v621_v31 }
  0x91   :  { %v339_v1 = vadd.f32 %v323_v56, %v660_v53  ;;  %v387_v2 = vadd.f32 %v371_v59, %v651_v51  ;;  %v343_v3 = vadd.f32 %v327_v60, %v663_v54  ;;  %v391_v6 = vadd.f32 %v375_v61, %v648_v50 }
  0x92   :  { %v689_v4 = vpop.f32.mrf.mxu2  ;;  %v691_v5 = vpop.f32.mrf.mxu3  ;;  %v163_v59 = vand.u32 15, %v682_v62 }
  0x93   :  { %v185_v10 = vrot.slane %v689_v4, 7  ;;  %v1160_v11 = vrot.slane %v689_v4, 1  ;;  %v189_v12 = vrot.slane %v691_v5, 7  ;;  %v704_v13 = vpop.f32.mrf.mxu1  ;;  %419 = vrot.lane.b32.xlu0 %v387_v2, %s511_s0  ;;  %356 = vst.msk [vmem:[%s1156_s2 + $0x8] sm:$0xff] %vm354_vm4, %v339_v1  ;;  %v720_v16 = vmul.f32 0.75, %v689_v4  ;;  %427 = vrot.lane.b32.xlu2 %v391_v6, %s511_s0  ;;  %v727_v22 = vpop.f32.mrf.mxu0 }
  0x94   :  { %v723_v17 = vmul.f32 0.75, %v691_v5  ;;  %v182_v18 = vrot.slane %v704_v13, 7  ;;  %360 = vst.msk [vmem:[%s1156_s2 + $0x28] sm:$0xff] %vm354_vm4, %v343_v3  ;;  %v1157_v30 = vrot.slane %v691_v5, 1  ;;  %v751_v55 = vmul.f32 0.75, %v704_v13 }
  0x95   :  { %v199_v27 = vsel %vm192_vm1, %v184_v63, %v185_v10  ;;  %v195_v29 = vsel %vm192_vm1, %v188_v0, %v189_v12  ;;  %v178_v1 = vrot.slane %v727_v22, 7  ;;  %v164_v3 = vand.u32 15, %v695_v7 }
  0x96   :  { %v331_v33 = vmul.f32 0.25, %v199_v27  ;;  %v335_v34 = vmul.f32 0.25, %v195_v29  ;;  %v202_v52 = vsel %vm192_vm1, %v181_v48, %v182_v18  ;;  %v232_v48 = vsel %vm225_vm2, %v1159_v9, %v1160_v11 }
  0x97   :  { %v264_v58 = vsel %vm641_vm3, %v704_v13, %v202_v52  ;;  %v379_v2 = vmul.f32 0.25, %v232_v48  ;;  %v228_v47 = vsel %vm225_vm2, %v221_v25, %v1157_v30  ;;  %v171_v6 = vand.u32 15, %v698_v8 }
  0x98   :  { %v347_v41 = vadd.f32 %v331_v33, %v720_v16  ;;  %v351_v60 = vadd.f32 %v335_v34, %v723_v17  ;;  %v328_v61 = vmul.f32 0.25, %v264_v58  ;;  %v1161_v27 = vrot.slane %v704_v13, 1 }
  0x99   :  { %v172_v52 = vand.u32 15, %v156_v24  ;;  %v160_v58 = vand.u32 15, %v597_v19  ;;  %v793_v7 = vmul.f32 0.75, %v623_v32  ;;  %v806_v30 = vadd.s32 72, %v597_v19 }
  0x9a   :  { %v344_v29 = vadd.f32 %v328_v61, %v751_v55  ;;  %v783_v33 = vpop.f32.mrf.mxu2  ;;  %v785_v34 = vpop.f32.mrf.mxu3  ;;  %364 = vst.msk [vmem:[%s1156_s2 + $0x48] sm:$0xff] %vm354_vm4, %v347_v41  ;;  %v206_v41 = vsel %vm192_vm1, %v177_v45, %v178_v1  ;;  %v395_v44 = vadd.f32 %v379_v2, %v758_v57  ;;  %v383_v36 = vmul.f32 0.25, %v228_v47 }
  0x9b   :  { %v186_v8 = vrot.slane %v783_v33, 7  ;;  %v190_v48 = vrot.slane %v785_v34, 7  ;;  %v797_v61 = vpop.f32.mrf.mxu1  ;;  %368 = vst.msk [vmem:[%s1156_s2 + $0x68] sm:$0xff] %vm354_vm4, %v351_v60  ;;  %v825_v60 = vmul.f32 0.75, %v783_v33  ;;  %v832_v2 = vmul.f32 0.75, %v785_v34  ;;  %v843_v11 = vpop.f32.mrf.mxu0 }
  0x9c   :  { %v183_v26 = vrot.slane %v797_v61, 7  ;;  %361 = vst.msk [vmem:[%s1156_s2 + $0x30] sm:$0xff] %vm354_vm4, %v344_v29  ;;  %435 = vrot.lane.b32.xlu2 %v395_v44, %s511_s0  ;;  %v260_v44 = vsel %vm729_vm7, %v727_v22, %v206_v41  ;;  %vm860_vm11 = vcmp.eq.s32.totalorder %v171_v6, 15  ;;  %v399_v42 = vadd.f32 %v383_v36, %v793_v7 }
  0x9d   :  { %v198_v9 = vsel %vm192_vm1, %v185_v10, %v186_v8  ;;  %v194_v45 = vsel %vm192_vm1, %v189_v12, %v190_v48  ;;  %v235_v12 = vsel %vm225_vm2, %v214_v49, %v1161_v27  ;;  %v866_v49 = vmul.f32 0.75, %v797_v61 }
  0x9e   :  { %v268_v47 = vsel %vm707_vm5, %v783_v33, %v198_v9  ;;  %v272_v29 = vsel %vm711_vm6, %v785_v34, %v194_v45  ;;  %v201_v10 = vsel %vm192_vm1, %v182_v18, %v183_v26  ;;  %v211_v45 = vrot.slane %v727_v22, 1  ;;  %443 = vrot.lane.b32.xlu0 %v399_v42, %s511_s0 }
  0x9f   :  { %v332_v14 = vmul.f32 0.25, %v268_v47  ;;  %v336_v15 = vmul.f32 0.25, %v272_v29  ;;  %v329_v28 = vmul.f32 0.25, %v201_v10  ;;  %vm869_vm12 = vcmp.eq.s32.totalorder %v164_v3, 0 }
  0xa0   :  { %vm873_vm13 = vcmp.eq.s32.totalorder %v172_v52, 0  ;;  %v179_v47 = vrot.slane %v843_v11, 7  ;;  %v295_v29 = vsel %vm753_vm8, %v633_v40, %v235_v12  ;;  %v324_v10 = vmul.f32 0.25, %v260_v44 }
  0xa1   :  { %v348_v6 = vadd.f32 %v332_v14, %v825_v60  ;;  %v352_v41 = vadd.f32 %v336_v15, %v832_v2  ;;  %v345_v3 = vadd.f32 %v329_v28, %v866_v49  ;;  %vm887_vm14 = vcmp.eq.s32.totalorder %v160_v58, 0 }
  0xa2   :  { %v885_v36 = vpop.f32.mrf.mxu2  ;;  %v169_v14 = vand.u32 15, %v806_v30  ;;  %v200_v15 = vsel %vm192_vm1, %v183_v26, %v184_v63  ;;  %v205_v40 = vsel %vm192_vm1, %v178_v1, %v179_v47  ;;  %v212_v58 = vrot.slane %v843_v11, 1  ;;  %v914_v26 = vpop.f32.mrf.mxu3 }
  0xa3   :  { %v187_v56 = vrot.slane %v885_v36, 7  ;;  %v220_v12 = vrot.slane %v885_v36, 1  ;;  %365 = vst.msk [vmem:[%s1156_s2 + $0x50] sm:$0xff] %vm354_vm4, %v348_v6  ;;  %vm907_vm15 = vcmp.eq.s32.totalorder %v163_v59, 15  ;;  %v912_v63 = vmul.f32 0.75, %v843_v11 }
  0xa4   :  { %v325_v1 = vmul.f32 0.25, %v205_v40  ;;  %v376_v44 = vmul.f32 0.25, %v295_v29  ;;  %362 = vst.msk [vmem:[%s1156_s2 + $0x38] sm:$0xff] %vm354_vm4, %v345_v3  ;;  %v219_v28 = vrot.slane %v783_v33, 1  ;;  %v239_v59 = vsel %vm225_vm2, %v210_v46, %v211_v45 }
  0xa5   :  { %v197_v62 = vsel %vm192_vm1, %v186_v8, %v187_v56  ;;  %v308_v42 = vmul.f32 0.75, %v727_v22  ;;  %369 = vst.msk [vmem:[%s1156_s2 + $0x70] sm:$0xff] %vm354_vm4, %v352_v41  ;;  %v223_v6 = vrot.slane %v785_v34, 1  ;;  %v266_v29 = vsel %vm801_vm9, %v621_v31, %v200_v15 }
  0xa6   :  { %v341_v8 = vadd.f32 %v325_v1, %v912_v63  ;;  %v229_v46 = vsel %vm225_vm2, %v220_v12, %v221_v25  ;;  %v317_v41 = vmul.f32 0.75, %v885_v36  ;;  %v333_v3 = vmul.f32 0.25, %v197_v62 }
  0xa7   :  { %v301_v22 = vsel %vm860_vm11, %v885_v36, %v229_v46  ;;  %v191_v40 = vrot.slane %v914_v26, 7  ;;  %v204_v24 = vsel %vm192_vm1, %v179_v47, %v180_v37  ;;  %v237_v15 = vsel %vm225_vm2, %v212_v58, %v213_v38 }
  0xa8   :  { %v196_v25 = vsel %vm192_vm1, %v187_v56, %v188_v0  ;;  %v392_v18 = vadd.f32 %v376_v44, %v663_v54  ;;  %358 = vst.msk [vmem:[%s1156_s2 + $0x18] sm:$0xff] %vm354_vm4, %v341_v8  ;;  %v349_v1 = vadd.f32 %v333_v3, %v317_v41  ;;  %v291_v54 = vsel %vm853_vm10, %v631_v39, %v239_v59 }
  0xa9   :  { %v193_v37 = vsel %vm192_vm1, %v190_v48, %v191_v40  ;;  %v208_v38 = vsel %vm192_vm1, %v191_v40, %v176_v43  ;;  %v382_v0 = vmul.f32 0.25, %v301_v22  ;;  %v977_v47 = vmul.f32 0.75, %v914_v26 }
  0xaa   :  { %v337_v56 = vmul.f32 0.25, %v193_v37  ;;  %429 = vrot.lane.b32.xlu2 %v392_v18, %s511_s0  ;;  %v372_v44 = vmul.f32 0.25, %v291_v54  ;;  %v262_v48 = vsel %vm869_vm12, %v601_v21, %v204_v24  ;;  %v270_v43 = vsel %vm873_vm13, %v623_v32, %v196_v25  ;;  %366 = vst.msk [vmem:[%s1156_s2 + $0x58] sm:$0xff] %vm354_vm4, %v349_v1 }
  0xab   :  { %v238_v9 = vsel %vm225_vm2, %v211_v45, %v212_v58  ;;  %v340_v39 = vadd.f32 %v324_v10, %v308_v42  ;;  %v258_v62 = vsel %vm887_vm14, %v599_v20, %v208_v38  ;;  %v330_v23 = vmul.f32 0.25, %v266_v29 }
  0xac   :  { %v353_v27 = vadd.f32 %v337_v56, %v977_v47  ;;  %v388_v21 = vadd.f32 %v372_v44, %v660_v53  ;;  %v373_v59 = vmul.f32 0.25, %v238_v9  ;;  %v224_v32 = vrot.slane %v914_v26, 1 }
  0xad   :  { %v1186_v45 = vrot.slane %v689_v4, 1  ;;  %vm283_vm0 = vcmp.eq.s32.totalorder %v169_v14, 15  ;;  %357 = vst.msk [vmem:[%s1156_s2 + $0x10] sm:$0xff] %vm354_vm4, %v340_v39  ;;  %v326_v52 = vmul.f32 0.25, %v262_v48  ;;  %v398_v58 = vadd.f32 %v382_v0, %v317_v41 }
  0xae   :  { %421 = vrot.lane.b32.xlu0 %v388_v21, %s511_s0  ;;  %v389_v53 = vadd.f32 %v373_v59, %v308_v42  ;;  %v293_v8 = vsel %vm907_vm15, %v843_v11, %v237_v15  ;;  %v334_v46 = vmul.f32 0.25, %v270_v43  ;;  %v322_v22 = vmul.f32 0.25, %v258_v62  ;;  %370 = vst.msk [vmem:[%s1156_s2 + $0x78] sm:$0xff] %vm354_vm4, %v353_v27 }
  0xaf   :  { %v231_v10 = vsel %vm225_vm2, %v1186_v45, %v219_v28  ;;  %v226_v14 = vsel %vm225_vm2, %v223_v6, %v224_v32  ;;  %v167_v42 = vand.u32 15, %v626_v35  ;;  %v374_v11 = vmul.f32 0.25, %v293_v8 }
  0xb0   :  { %v299_v29 = vsel %vm283_vm0, %v689_v4, %v231_v10  ;;  %v216_v4 = vrot.slane %v797_v61, 1  ;;  %423 = vrot.lane.b32.xlu1 %v389_v53, %s511_s0  ;;  %v159_v41 = vadd.s32 120, %v597_v19  ;;  %v385_v3 = vmul.f32 0.25, %v226_v14 }
  0xb1   :  { %v380_v30 = vmul.f32 0.25, %v299_v29  ;;  %v342_v40 = vadd.f32 %v326_v52, %v648_v50  ;;  %v346_v24 = vadd.f32 %v330_v23, %v758_v57  ;;  %v338_v15 = vadd.f32 %v322_v22, %v651_v51 }
  0xb2   :  { %441 = vrot.lane.b32.xlu2 %v398_v58, %s511_s0  ;;  %v350_v25 = vadd.f32 %v334_v46, %v793_v7  ;;  %v1187_v35 = vrot.slane %v621_v31, 1  ;;  %vm281_vm1 = vcmp.eq.s32.totalorder %v167_v42, 15  ;;  %v1188_v50 = vrot.slane %v704_v13, 1 }
  0xb3   :  { %v396_v1 = vadd.f32 %v380_v30, %v720_v16  ;;  %359 = vst.msk [vmem:[%s1156_s2 + $0x20] sm:$0xff] %vm354_vm4, %v342_v40  ;;  %v175_v31 = vand.u32 15, %v159_v41  ;;  %v390_v16 = vadd.f32 %v374_v11, %v912_v63  ;;  %v401_v57 = vadd.f32 %v385_v3, %v832_v2 }
  0xb4   :  { %v233_v18 = vsel %vm225_vm2, %v216_v4, %v1187_v35  ;;  %v234_v51 = vsel %vm225_vm2, %v1188_v50, %v216_v4  ;;  %363 = vst.msk [vmem:[%s1156_s2 + $0x40] sm:$0xff] %vm354_vm4, %v346_v24  ;;  %v1189_v63 = vrot.slane %v599_v20, 1  ;;  %v230_v20 = vsel %vm225_vm2, %v219_v28, %v220_v12 }
  0xb5   :  { %355 = vst.msk [vmem:[%s1156_s2] sm:$0xff] %vm354_vm4, %v338_v15  ;;  %v297_v13 = vsel %vm281_vm1, %v797_v61, %v233_v18  ;;  %v377_v7 = vmul.f32 0.25, %v234_v51  ;;  %vm289_vm3 = vcmp.eq.s32.totalorder %v175_v31, 15  ;;  %v157_v61 = vadd.s32 104, %v597_v19 }
  0xb6   :  { %437 = vrot.lane.b32.xlu0 %v396_v1, %s511_s0  ;;  %367 = vst.msk [vmem:[%s1156_s2 + $0x60] sm:$0xff] %vm354_vm4, %v350_v25  ;;  %v378_v37 = vmul.f32 0.25, %v297_v13  ;;  %v241_v2 = vsel %vm225_vm2, %v224_v32, %v1189_v63  ;;  %vm467_vm5 = vcmask 523520  }
  0xb7   :  { %v393_v38 = vadd.f32 %v377_v7, %v751_v55  ;;  %v305_v54 = vsel %vm289_vm3, %v914_v26, %v241_v2  ;;  %v173_v44 = vand.u32 15, %v157_v61  ;;  %v381_v55 = vmul.f32 0.25, %v230_v20 }
  0xb8   :  { %425 = vrot.lane.b32.xlu1 %v390_v16, %s511_s0  ;;  %v394_v0 = vadd.f32 %v378_v37, %v866_v49  ;;  %v386_v56 = vmul.f32 0.25, %v305_v54  ;;  %v1190_v26 = vrot.slane %v691_v5, 1 }
  0xb9   :  { %vm287_vm4 = vcmp.eq.s32.totalorder %v173_v44, 15  ;;  %v397_v33 = vadd.f32 %v381_v55, %v825_v60 }
  0xba   :  { %447 = vrot.lane.b32.xlu2 %v401_v57, %s511_s0  ;;  %v402_v48 = vadd.f32 %v386_v56, %v977_v47  ;;  %v227_v49 = vsel %vm225_vm2, %v1190_v26, %v223_v6 }
  0xbb   :  { %v303_v36 = vsel %vm287_vm4, %v691_v5, %v227_v49 }
  0xbc   :  { %v384_v12 = vmul.f32 0.25, %v303_v36 }
  0xbe   :  { %431 = vrot.lane.b32.xlu0 %v393_v38, %s511_s0  ;;  %v400_v28 = vadd.f32 %v384_v12, %v723_v17 }
  0xc0   :  { %433 = vrot.lane.b32.xlu1 %v394_v0, %s511_s0 }
  0xc6   :  { %449 = vrot.lane.b32.xlu0 %v402_v48, %s511_s0 }
  0xc8   :  { %439 = vrot.lane.b32.xlu1 %v397_v33, %s511_s0 }
  0xd0   :  { %445 = vrot.lane.b32.xlu1 %v400_v28, %s511_s0 }
  0xed   :  { %v428_v34 = vpop.permute.xlu2 %427 }
  0xee   :  { %472 = vst.msk [vmem:[%s1156_s2 + $0x20] sm:$0xff] %vm467_vm5, %v428_v34 }
  0xf6   :  { %v436_v19 = vpop.permute.xlu2 %435 }
  0xf7   :  { %476 = vst.msk [vmem:[%s1156_s2 + $0x40] sm:$0xff] %vm467_vm5, %v436_v19 }
 0x104   :  { %v430_v5 = vpop.permute.xlu2 %429 }
 0x105   :  { %473 = vst.msk [vmem:[%s1156_s2 + $0x28] sm:$0xff] %vm467_vm5, %v430_v5  ;;  %v420_v17 = vpop.permute.xlu0 %419 }
 0x106   :  { %468 = vst.msk [vmem:[%s1156_s2] sm:$0xff] %vm467_vm5, %v420_v17 }
 0x10c   :  { %v442_v60 = vpop.permute.xlu2 %441 }
 0x10d   :  { %479 = vst.msk [vmem:[%s1156_s2 + $0x58] sm:$0xff] %vm467_vm5, %v442_v60 }
 0x110   :  { %v444_v6 = vpop.permute.xlu0 %443 }
 0x111   :  { %480 = vst.msk [vmem:[%s1156_s2 + $0x60] sm:$0xff] %vm467_vm5, %v444_v6 }
 0x114   :  { %v448_v47 = vpop.permute.xlu2 %447 }
 0x115   :  { %482 = vst.msk [vmem:[%s1156_s2 + $0x70] sm:$0xff] %vm467_vm5, %v448_v47 }
 0x120   :  { %v422_v43 = vpop.permute.xlu0 %421 }
 0x121   :  { %469 = vst.msk [vmem:[%s1156_s2 + $0x8] sm:$0xff] %vm467_vm5, %v422_v43 }
 0x122   :  { %v424_v9 = vpop.permute.xlu1 %423 }
 0x123   :  { %470 = vst.msk [vmem:[%s1156_s2 + $0x10] sm:$0xff] %vm467_vm5, %v424_v9 }
 0x128   :  { %v438_v39 = vpop.permute.xlu0 %437 }
 0x129   :  { %477 = vst.msk [vmem:[%s1156_s2 + $0x48] sm:$0xff] %vm467_vm5, %v438_v39 }
 0x12a   :  { %v426_v62 = vpop.permute.xlu1 %425 }
 0x12b   :  { %471 = vst.msk [vmem:[%s1156_s2 + $0x18] sm:$0xff] %vm467_vm5, %v426_v62 }
 0x130   :  { %v432_v27 = vpop.permute.xlu0 %431 }
 0x131   :  { %474 = vst.msk [vmem:[%s1156_s2 + $0x30] sm:$0xff] %vm467_vm5, %v432_v27 }
 0x132   :  { %v434_v21 = vpop.permute.xlu1 %433 }
 0x133   :  { %475 = vst.msk [vmem:[%s1156_s2 + $0x38] sm:$0xff] %vm467_vm5, %v434_v21 }
 0x138   :  { %v450_v59 = vpop.permute.xlu0 %449 }
 0x139   :  { %483 = vst.msk [vmem:[%s1156_s2 + $0x78] sm:$0xff] %vm467_vm5, %v450_v59 }
 0x13a   :  { %v440_v23 = vpop.permute.xlu1 %439 }
 0x13b   :  { %478 = vst.msk [vmem:[%s1156_s2 + $0x50] sm:$0xff] %vm467_vm5, %v440_v23 }
 0x142   :  { %v446_v32 = vpop.permute.xlu1 %445 }
 0x143   :  { %481 = vst.msk [vmem:[%s1156_s2 + $0x68] sm:$0xff] %vm467_vm5, %v446_v32 }

</bundles_post_ra>
